<compile_context>
chip_gen: v5e
topology: v5e:2x2
jax: 0.10.0
libtpu: 0.0.40
codegen_flags: <defaults>
</compile_context>

<pallas_src>
import functools

import jax
import jax.numpy as jnp
import numpy as np
from jax.experimental import pallas as pl
from jax.experimental.pallas import tpu as pltpu


def _loss1_kernel(yp_ref, yt_ref, w_ref, out_ref, *, alf, lam, n_valid):
    # Transposed layout: (n_pad, tB) -- classes on sublanes, batch on lanes.
    yp = yp_ref[...].astype(jnp.float32)   # (n_pad, tB)
    yt = yt_ref[...].astype(jnp.float32)   # (n_pad, tB)
    w = w_ref[...].astype(jnp.float32)     # (n_pad, 1) class weights (0 on pads)

    n_pad = yp.shape[0]
    neg_big = jnp.float32(-1e30)
    a2 = alf * alf

    # Validity mask over the (padded) class sublanes.
    cls = jax.lax.broadcasted_iota(jnp.int32, (n_pad, 1), 0)        # (n_pad, 1)
    valid = cls < n_valid                                           # (n_pad, 1)

    # Shared per-example (per lane) sublane reductions.  Pads are zero so they
    # do not perturb the sums.
    sp2 = jnp.sum(yp * yp, axis=0, keepdims=True)                   # (1, tB)
    spt = jnp.sum(yp * yt, axis=0, keepdims=True)                   # (1, tB)
    st2 = jnp.sum(yt * yt, axis=0, keepdims=True)                   # (1, tB)

    # La = F.mse_loss(yp, alf*yt) * n == sum((yp - alf*yt)^2), expanded.
    La = sp2 - 2.0 * alf * spt + a2 * st2                           # (1, tB)

    # d_i = ||yp - alf*e_i||^2 = sum(yp^2) - 2*alf*yp_i + alf^2 (per class i).
    d = sp2 - 2.0 * alf * yp + a2                                   # (n_pad, tB)

    # Lt = log(1 + sum_i exp(La - d_i)), max-shifted logsumexp (overflow-safe),
    # padded class slots masked out.
    z = jnp.where(valid, La - d, neg_big)                           # (n_pad, tB)
    m = jnp.maximum(jnp.max(z, axis=0, keepdims=True), 0.0)         # (1, tB)
    s = jnp.sum(jnp.where(valid, jnp.exp(z - m), 0.0),
                axis=0, keepdims=True)                              # (1, tB)
    Lt = m + jnp.log(jnp.exp(-m) + s)                               # (1, tB)

    L = Lt + lam * La                                               # (1, tB)

    # w0[argmax(yt)] with FIRST-occurrence tie handling (== torch.argmax):
    yt_m = jnp.where(valid, yt, neg_big)                            # (n_pad, tB)
    ymax = jnp.max(yt_m, axis=0, keepdims=True)                     # (1, tB)
    is_max = yt_m == ymax                                           # (n_pad, tB)
    cls_b = jax.lax.broadcasted_iota(jnp.int32, yp.shape, 0)        # (n_pad, tB)
    amax = jnp.min(jnp.where(is_max, cls_b, jnp.int32(n_pad)),
                   axis=0, keepdims=True)                           # (1, tB)
    w_sel = jnp.sum(jnp.where(cls_b == amax, w, 0.0),
                    axis=0, keepdims=True)                          # (1, tB)

    L = L * w_sel
    # data-dependent Python `if L < 1.5: L *= 1.8` -> branch-free select
    L = jnp.where(L < 1.5, L * 1.8, L)

    out_ref[...] = (1.5 * L).astype(out_ref.dtype)


def loss1_pallas_batched(yp, yt, w0, *, alf, lam, block_b=2048):
    """Batched Loss1: yp, yt are (B, n); returns (B,) losses (f32)."""
    B, n = yp.shape
    n_pad = max(8, ((n + 7) // 8) * 8)            # classes -> sublanes (pad to 8)

    # Batch tile: multiple of 128 lanes, clamped to the (padded) batch size.
    b128 = 128 * pl.cdiv(B, 128)
    tB = min(int(block_b), b128)
    tB = max(128, (tB // 128) * 128)
    B_pad = tB * pl.cdiv(B, tB)

    # Transpose to classes-on-sublanes / batch-on-lanes and zero-pad.
    yp_t = jnp.zeros((n_pad, B_pad), dtype=yp.dtype).at[:n, :B].set(yp.T)
    yt_t = jnp.zeros((n_pad, B_pad), dtype=yt.dtype).at[:n, :B].set(yt.T)
    w_t = jnp.zeros((n_pad, 1), jnp.float32).at[:n, 0].set(
        jnp.asarray(w0, jnp.float32))

    kernel = functools.partial(
        _loss1_kernel, alf=float(alf), lam=float(lam), n_valid=int(n))

    out = pl.pallas_call(
        kernel,
        out_shape=jax.ShapeDtypeStruct((1, B_pad), jnp.float32),
        grid_spec=pltpu.PrefetchScalarGridSpec(
            num_scalar_prefetch=0,
            grid=(B_pad // tB,),
            in_specs=[
                pl.BlockSpec((n_pad, tB), lambda i: (0, i)),
                pl.BlockSpec((n_pad, tB), lambda i: (0, i)),
                # constant index_map: weight column stays resident across steps
                pl.BlockSpec((n_pad, 1), lambda i: (0, 0)),
            ],
            out_specs=pl.BlockSpec((1, tB), lambda i: (0, i)),
        ),
        compiler_params=pltpu.CompilerParams(
            dimension_semantics=("parallel",)),
    )(yp_t, yt_t, w_t)
    return out[0, :B]


def loss1_pallas(yp, yt, w0, *, alf, lam):
    """Single-example Loss1 matching the PyTorch forward(yp, yt).

    Launch overhead dominates at B=1 / n=3..8; prefer the batched entry point
    when evaluating many losses.
    """
    n = yp.shape[0]
    return loss1_pallas_batched(
        yp.reshape(1, n), yt.reshape(1, n), w0, alf=alf, lam=lam)[0]


def make_class_weights(class_counts):
    # genw(df): W = (counts/max)^-1 ; W /= max(W)   (deterministic synthetic df)
    counts = np.asarray(class_counts, dtype=np.float64)
    s = counts.max()
    W = (counts / s) ** (-1)
    W = W / W.max()
    return W.astype(np.float32)


def loss1_ref_numpy(yp, yt, C, w0, alf, lam):
    yp = np.asarray(yp, np.float32)
    yt = np.asarray(yt, np.float32)
    C = np.asarray(C, np.float32)
    n = yp.shape[0]
    La = np.mean((yp - alf * yt) ** 2) * n
    d = [np.mean((yp - alf * C[i]) ** 2) * n for i in range(n)]
    Lt = np.log(1.0 + sum(np.exp(La - di) for di in d))
    L = Lt + lam * La
    L = L * float(w0[int(np.argmax(yt))])
    if L < 1.5:
        L = L * 1.8
    return 1.5 * L


if __name__ == "__main__":
    alf, lam = 0.9, 0.5
    key = jax.random.PRNGKey(0)

    # ---- Test 1: module default n=3, batch of 4 -------------------------
    n, B = 3, 4
    k1, k2 = jax.random.split(key)
    yp_b = jax.random.normal(k1, (B, n), dtype=jnp.float32)
    yt_b = jax.random.uniform(k2, (B, n), dtype=jnp.float32)
    C = np.eye(n, dtype=np.float32)            # genc(n) stacked -> identity
    w0 = jnp.asarray(make_class_weights([5, 10, 3][:n]))

    out = jax.block_until_ready(
        loss1_pallas_batched(yp_b, yt_b, w0, alf=alf, lam=lam))
    ref = np.array([
        loss1_ref_numpy(np.array(yp_b[i]), np.array(yt_b[i]), C,
                        np.array(w0), alf, lam) for i in range(B)
    ])
    assert np.allclose(np.array(out), ref, rtol=1e-4, atol=1e-4), (np.array(out), ref)

    # Single-example path (matches the PyTorch module forward exactly).
    out1 = jax.block_until_ready(
        loss1_pallas(yp_b[0], yt_b[0], w0, alf=alf, lam=lam))
    assert np.allclose(float(out1), ref[0], rtol=1e-4, atol=1e-4), (float(out1), ref[0])

    # ---- Test 2: n=8 classes, batch of 4 (exercises sublane padding) ----
    n, B = 8, 4
    k3, k4 = jax.random.split(k1)
    yp_b = jax.random.normal(k3, (B, n), dtype=jnp.float32)
    yt_b = jax.random.uniform(k4, (B, n), dtype=jnp.float32)
    C = np.eye(n, dtype=np.float32)
    w0 = jnp.asarray(make_class_weights([5, 10, 3, 8, 12, 6, 9, 4]))

    out = jax.block_until_ready(
        loss1_pallas_batched(yp_b, yt_b, w0, alf=alf, lam=lam))
    ref = np.array([
        loss1_ref_numpy(np.array(yp_b[i]), np.array(yt_b[i]), C,
                        np.array(w0), alf, lam) for i in range(B)
    ])
    assert np.allclose(np.array(out), ref, rtol=1e-4, atol=1e-4), (np.array(out), ref)

    print("KERNEL_OK")
</pallas_src>

<mosaic_0001>
module attributes {stable_mosaic.version = 11 : i64} {
  func.func @_loss1_kernel(%arg0: i32, %arg1: memref<8x128xf32, #tpu.memory_space<vmem>>, %arg2: memref<8x128xf32, #tpu.memory_space<vmem>>, %arg3: memref<8x1xf32, #tpu.memory_space<vmem>>, %arg4: memref<1x128xf32, #tpu.memory_space<vmem>>) attributes {dimension_semantics = [#tpu.dimension_semantics<parallel>], iteration_bounds = array<i64: 1>, scalar_prefetch = 0 : i64, scratch_operands = 0 : i64, tpu.core_type = #tpu.core_type<tc>, window_params = [{transform_indices = @transform_0, window_bounds = array<i64: 8, 128>}, {transform_indices = @transform_1, window_bounds = array<i64: 8, 128>}, {pipeline_mode = #tpu.pipeline_mode<synchronous>, transform_indices = @transform_2, window_bounds = array<i64: 8, 1>}, {transform_indices = @transform_3, window_bounds = array<i64: 1, 128>}]} {
    %c0 = arith.constant 0 : index
    %c0_0 = arith.constant 0 : index
    %0 = vector.load %arg1[%c0, %c0_0] : memref<8x128xf32, #tpu.memory_space<vmem>>, vector<8x128xf32>
    %c0_1 = arith.constant 0 : index
    %c0_2 = arith.constant 0 : index
    %1 = vector.load %arg2[%c0_1, %c0_2] : memref<8x128xf32, #tpu.memory_space<vmem>>, vector<8x128xf32>
    %c0_3 = arith.constant 0 : index
    %c0_4 = arith.constant 0 : index
    %2 = vector.load %arg3[%c0_3, %c0_4] : memref<8x1xf32, #tpu.memory_space<vmem>>, vector<8x1xf32>
    %3 = tpu.iota {dimensions = array<i32: 0>} : vector<8x1xi32>
    %c3_i32 = arith.constant 3 : i32
    %4 = vector.broadcast %c3_i32 : i32 to vector<8x1xi32>
    %5 = arith.cmpi slt, %3, %4 : vector<8x1xi32>
    %6 = arith.mulf %0, %0 : vector<8x128xf32>
    %cst = arith.constant dense<0.000000e+00> : vector<128xf32>
    %7 = vector.multi_reduction <add>, %6, %cst [0] : vector<8x128xf32> to vector<128xf32>
    %8 = vector.shape_cast %7 : vector<128xf32> to vector<1x128xf32>
    %9 = arith.mulf %0, %1 : vector<8x128xf32>
    %cst_5 = arith.constant dense<0.000000e+00> : vector<128xf32>
    %10 = vector.multi_reduction <add>, %9, %cst_5 [0] : vector<8x128xf32> to vector<128xf32>
    %11 = vector.shape_cast %10 : vector<128xf32> to vector<1x128xf32>
    %12 = arith.mulf %1, %1 : vector<8x128xf32>
    %cst_6 = arith.constant dense<0.000000e+00> : vector<128xf32>
    %13 = vector.multi_reduction <add>, %12, %cst_6 [0] : vector<8x128xf32> to vector<128xf32>
    %14 = vector.shape_cast %13 : vector<128xf32> to vector<1x128xf32>
    %cst_7 = arith.constant 1.800000e+00 : f32
    %15 = vector.broadcast %cst_7 : f32 to vector<1x128xf32>
    %16 = arith.mulf %15, %11 : vector<1x128xf32>
    %17 = arith.subf %8, %16 : vector<1x128xf32>
    %cst_8 = arith.constant 8.100000e-01 : f32
    %18 = vector.broadcast %cst_8 : f32 to vector<1x128xf32>
    %19 = arith.mulf %18, %14 : vector<1x128xf32>
    %20 = arith.addf %17, %19 : vector<1x128xf32>
    %cst_9 = arith.constant 1.800000e+00 : f32
    %21 = vector.broadcast %cst_9 : f32 to vector<8x128xf32>
    %22 = arith.mulf %21, %0 : vector<8x128xf32>
    %23 = vector.broadcast %8 : vector<1x128xf32> to vector<8x128xf32>
    %24 = arith.subf %23, %22 : vector<8x128xf32>
    %cst_10 = arith.constant 8.100000e-01 : f32
    %25 = vector.broadcast %cst_10 : f32 to vector<8x128xf32>
    %26 = arith.addf %24, %25 : vector<8x128xf32>
    %27 = vector.broadcast %20 : vector<1x128xf32> to vector<8x128xf32>
    %28 = arith.subf %27, %26 : vector<8x128xf32>
    %cst_11 = arith.constant -1.000000e+30 : f32
    %29 = vector.shape_cast %5 : vector<8x1xi1> to vector<8x1xi1>
    %30 = vector.broadcast %29 : vector<8x1xi1> to vector<8x128xi1>
    %31 = vector.broadcast %cst_11 : f32 to vector<8x128xf32>
    %32 = arith.select %30, %28, %31 : vector<8x128xi1>, vector<8x128xf32>
    %cst_12 = arith.constant dense<0xFF800000> : vector<128xf32>
    %33 = vector.multi_reduction <maximumf>, %32, %cst_12 [0] : vector<8x128xf32> to vector<128xf32>
    %34 = vector.shape_cast %33 : vector<128xf32> to vector<1x128xf32>
    %cst_13 = arith.constant 0.000000e+00 : f32
    %35 = vector.broadcast %cst_13 : f32 to vector<1x128xf32>
    %36 = arith.maximumf %34, %35 : vector<1x128xf32>
    %37 = vector.broadcast %36 : vector<1x128xf32> to vector<8x128xf32>
    %38 = arith.subf %32, %37 : vector<8x128xf32>
    %39 = math.exp %38 : vector<8x128xf32>
    %cst_14 = arith.constant 0.000000e+00 : f32
    %40 = vector.shape_cast %5 : vector<8x1xi1> to vector<8x1xi1>
    %41 = vector.broadcast %40 : vector<8x1xi1> to vector<8x128xi1>
    %42 = vector.broadcast %cst_14 : f32 to vector<8x128xf32>
    %43 = arith.select %41, %39, %42 : vector<8x128xi1>, vector<8x128xf32>
    %cst_15 = arith.constant dense<0.000000e+00> : vector<128xf32>
    %44 = vector.multi_reduction <add>, %43, %cst_15 [0] : vector<8x128xf32> to vector<128xf32>
    %45 = vector.shape_cast %44 : vector<128xf32> to vector<1x128xf32>
    %cst_16 = arith.constant 0.000000e+00 : f32
    %46 = vector.broadcast %cst_16 : f32 to vector<1x128xf32>
    %47 = arith.subf %46, %36 : vector<1x128xf32>
    %48 = math.exp %47 : vector<1x128xf32>
    %49 = arith.addf %48, %45 : vector<1x128xf32>
    %50 = math.log %49 : vector<1x128xf32>
    %51 = arith.addf %36, %50 : vector<1x128xf32>
    %cst_17 = arith.constant 5.000000e-01 : f32
    %52 = vector.broadcast %cst_17 : f32 to vector<1x128xf32>
    %53 = arith.mulf %52, %20 : vector<1x128xf32>
    %54 = arith.addf %51, %53 : vector<1x128xf32>
    %cst_18 = arith.constant -1.000000e+30 : f32
    %55 = vector.shape_cast %5 : vector<8x1xi1> to vector<8x1xi1>
    %56 = vector.broadcast %55 : vector<8x1xi1> to vector<8x128xi1>
    %57 = vector.broadcast %cst_18 : f32 to vector<8x128xf32>
    %58 = arith.select %56, %1, %57 : vector<8x128xi1>, vector<8x128xf32>
    %cst_19 = arith.constant dense<0xFF800000> : vector<128xf32>
    %59 = vector.multi_reduction <maximumf>, %58, %cst_19 [0] : vector<8x128xf32> to vector<128xf32>
    %60 = vector.shape_cast %59 : vector<128xf32> to vector<1x128xf32>
    %61 = vector.broadcast %60 : vector<1x128xf32> to vector<8x128xf32>
    %62 = arith.cmpf oeq, %58, %61 : vector<8x128xf32>
    %63 = tpu.iota {dimensions = array<i32: 0>} : vector<8x128xi32>
    %c8_i32 = arith.constant 8 : i32
    %64 = vector.broadcast %c8_i32 : i32 to vector<8x128xi32>
    %65 = arith.select %62, %63, %64 : vector<8x128xi1>, vector<8x128xi32>
    %cst_20 = arith.constant dense<2147483647> : vector<128xi32>
    %66 = vector.multi_reduction <minsi>, %65, %cst_20 [0] : vector<8x128xi32> to vector<128xi32>
    %67 = vector.shape_cast %66 : vector<128xi32> to vector<1x128xi32>
    %68 = vector.broadcast %67 : vector<1x128xi32> to vector<8x128xi32>
    %69 = arith.cmpi eq, %63, %68 : vector<8x128xi32>
    %cst_21 = arith.constant 0.000000e+00 : f32
    %70 = vector.shape_cast %2 : vector<8x1xf32> to vector<8x1xf32>
    %71 = vector.broadcast %70 : vector<8x1xf32> to vector<8x128xf32>
    %72 = vector.broadcast %cst_21 : f32 to vector<8x128xf32>
    %73 = arith.select %69, %71, %72 : vector<8x128xi1>, vector<8x128xf32>
    %cst_22 = arith.constant dense<0.000000e+00> : vector<128xf32>
    %74 = vector.multi_reduction <add>, %73, %cst_22 [0] : vector<8x128xf32> to vector<128xf32>
    %75 = vector.shape_cast %74 : vector<128xf32> to vector<1x128xf32>
    %76 = arith.mulf %54, %75 : vector<1x128xf32>
    %cst_23 = arith.constant 1.500000e+00 : f32
    %77 = vector.broadcast %cst_23 : f32 to vector<1x128xf32>
    %78 = arith.cmpf olt, %76, %77 : vector<1x128xf32>
    %cst_24 = arith.constant 1.800000e+00 : f32
    %79 = vector.broadcast %cst_24 : f32 to vector<1x128xf32>
    %80 = arith.mulf %76, %79 : vector<1x128xf32>
    %81 = arith.select %78, %80, %76 : vector<1x128xi1>, vector<1x128xf32>
    %cst_25 = arith.constant 1.500000e+00 : f32
    %82 = vector.broadcast %cst_25 : f32 to vector<1x128xf32>
    %83 = arith.mulf %82, %81 : vector<1x128xf32>
    %c0_26 = arith.constant 0 : index
    %c0_27 = arith.constant 0 : index
    %84 = vector.load %arg4[%c0_26, %c0_27] : memref<1x128xf32, #tpu.memory_space<vmem>>, vector<1x128xf32>
    tpu.vector_store %arg4[%c0_26, %c0_27], %83 {strides = array<i32>} : memref<1x128xf32, #tpu.memory_space<vmem>>, vector<1x128xf32>,
    return
  }
  func.func @transform_0(%arg0: i32) -> (i32, i32) {
    %c0_i32 = arith.constant 0 : i32
    %c0_i32_0 = arith.constant 0 : i32
    return %c0_i32, %arg0 : i32, i32
  }
  func.func @transform_1(%arg0: i32) -> (i32, i32) {
    %c0_i32 = arith.constant 0 : i32
    %c0_i32_0 = arith.constant 0 : i32
    return %c0_i32, %arg0 : i32, i32
  }
  func.func @transform_2(%arg0: i32) -> (i32, i32) {
    %c0_i32 = arith.constant 0 : i32
    %c0_i32_0 = arith.constant 0 : i32
    %c0_i32_1 = arith.constant 0 : i32
    return %c0_i32, %c0_i32_0 : i32, i32
  }
  func.func @transform_3(%arg0: i32) -> (i32, i32) {
    %c0_i32 = arith.constant 0 : i32
    %c0_i32_0 = arith.constant 0 : i32
    return %c0_i32, %arg0 : i32, i32
  }
}

</mosaic_0001>

<bundles_post_ra>
// kernel: tpu_custom_call.1
= control target key start
LH: loop header
LB: loop body
LE: loop exit
PB: predicated region body
PF: predicated region fallthrough
CT: control target
= control target key end

     0   :  { %8 = vsyncpa [#allocation3], 0  ;;  %s247_s0 = inlined_call_operand.vmem [shape: f32[8,128], index: 0, kind: input, shape index: {}]   ;;  %s248_s1 = inlined_call_operand.hbm [shape: f32[8,128], index: 1, kind: input, shape index: {}]   ;;  %s249_s2 = inlined_call_operand.vmem [shape: f32[8,1], index: 2, kind: input, shape index: {}]   ;;  %s250_s3 = inlined_call_operand.hbm [shape: f32[1,128], index: 3, kind: output, shape index: {}]  }
   0x1   :  { %9 = vsyncpa [#allocation4], 0  ;;  %s17_s14 = sshll.u32 %s248_s1, 4  ;;  %s209_s15 = smov [#allocation2]   ;;  %s18_s14 = int_to_ptr.hbm [resolvable:$true] %s17_s14 }
   0x2   :  { %s19_s16 = sshll.u32 %s209_s15, 4  ;;  %s20_s16 = int_to_ptr.vmem [resolvable:$true] %s19_s16 }
   0x3   :  { %22 = dma.hbm_to_vmem [thread:$0]  %s18_s14, 128, %s20_s16, [#allocation3]  }
   0x4   :  { %205 = dma.done.wait [#allocation3], 128  }
   0x5   :  { %206 = vsyncadd [#allocation3], 4294967168  ;;  %v210_v0 = vmov 0   ;;  %v31_v1 = vld [vmem:[%s249_s2] sm:$0xff]  ;;  %v32_v20 = vlaneseq  ;;  %s137_s22 = sshll.u32 %s250_s3, 4  ;;  %s138_s22 = int_to_ptr.hbm [resolvable:$true] %s137_s22 }
   0x6   :  { %150 = vset.pattern.permute.xlu0 %v210_v0  ;;  %v29_v2 = vld [vmem:[%s247_s0] sm:$0xff]  ;;  %s211_s0 = smov [#allocation5]  }
   0x7   :  { %114 = vperm.xlu0 %150, %v31_v1   ;;  %v30_v3 = vld [vmem:[#allocation2] sm:$0xff]  ;;  %v35_v5 = vmul.f32 %v29_v2, %v29_v2  ;;  %v60_v27 = vmul.f32 1.8, %v29_v2  ;;  %v33_v28 = vshrl.u32 %v32_v20, 7  ;;  %s135_s1 = sshll.u32 %s211_s0, 4  ;;  %s136_s1 = int_to_ptr.vmem [resolvable:$true] %s135_s1 }
   0x8   :  { %v42_v4 = vmul.f32 %v30_v3, %v29_v2  ;;  %v49_v7 = vmul.f32 %v30_v3, %v30_v3 }
   0x9   :  { %v36_v8 = vrot.slane %v35_v5, 4  ;;  %vm34_vm0 = vcmp.lt.s32.totalorder %v33_v28, 3 }
   0xa   :  { %v43_v6 = vrot.slane %v42_v4, 4  ;;  %v50_v10 = vrot.slane %v49_v7, 4  ;;  %v93_v43 = vsel %vm34_vm0, %v30_v3, -1e+30 }
   0xb   :  { %v37_v11 = vadd.f32 %v36_v8, %v35_v5  ;;  %v94_v44 = vrot.slane %v93_v43, 4 }
   0xc   :  { %v44_v9 = vadd.f32 %v43_v6, %v42_v4  ;;  %v51_v13 = vadd.f32 %v50_v10, %v49_v7 }
   0xd   :  { %v38_v14 = vrot.slane %v37_v11, 2  ;;  %v95_v45 = vmax.f32 %v93_v43, %v94_v44 }
   0xe   :  { %v45_v12 = vrot.slane %v44_v9, 2  ;;  %v52_v16 = vrot.slane %v51_v13, 2 }
   0xf   :  { %v39_v17 = vadd.f32 %v38_v14, %v37_v11  ;;  %v96_v47 = vrot.slane %v95_v45, 2 }
  0x10   :  { %v46_v15 = vadd.f32 %v45_v12, %v44_v9  ;;  %v53_v19 = vadd.f32 %v52_v16, %v51_v13 }
  0x11   :  { %v40_v21 = vrot.slane %v39_v17, 1  ;;  %v97_v49 = vmax.f32 %v95_v45, %v96_v47 }
  0x12   :  { %v47_v18 = vrot.slane %v46_v15, 1  ;;  %v54_v23 = vrot.slane %v53_v19, 1 }
  0x13   :  { %v41_v24 = vadd.f32 %v40_v21, %v39_v17  ;;  %v98_v50 = vrot.slane %v97_v49, 1 }
  0x14   :  { %v48_v22 = vadd.f32 %v47_v18, %v46_v15  ;;  %v55_v25 = vadd.f32 %v54_v23, %v53_v19 }
  0x15   :  { %v61_v31 = vsub.f32 %v41_v24, %v60_v27  ;;  %v99_v51 = vmax.f32 %v97_v49, %v98_v50 }
  0x16   :  { %v56_v26 = vmul.f32 1.8, %v48_v22  ;;  %v58_v30 = vmul.f32 0.81, %v55_v25 }
  0x17   :  { %v62_v33 = vadd.f32 0.81, %v61_v31  ;;  %vm100_vm1 = vcmp.eq.f32.partialorder %v93_v43, %v99_v51 }
  0x18   :  { %v57_v29 = vsub.f32 %v41_v24, %v56_v26  ;;  %v101_v55 = vsel %vm100_vm1, %v33_v28, 8 }
  0x19   :  { %v102_v56 = vrot.slane %v101_v55, 4 }
  0x1a   :  { %v59_v32 = vadd.f32 %v58_v30, %v57_v29 }
  0x1b   :  { %vm103_vm2 = vcmp.lt.s32.totalorder %v101_v55, %v102_v56 }
  0x1c   :  { %v63_v34 = vsub.f32 %v59_v32, %v62_v33  ;;  %v104_v60 = vsel %vm103_vm2, %v101_v55, %v102_v56  ;;  %v91_v14 = vmul.f32 0.5, %v59_v32 }
  0x1d   :  { %v105_v63 = vrot.slane %v104_v60, 2 }
  0x1e   :  { %v66_v35 = vsel %vm34_vm0, %v63_v34, -1e+30 }
  0x1f   :  { %v67_v36 = vrot.slane %v66_v35, 4  ;;  %vm106_vm3 = vcmp.lt.s32.totalorder %v104_v60, %v105_v63 }
  0x20   :  { %v107_v2 = vsel %vm106_vm3, %v104_v60, %v105_v63 }
  0x21   :  { %v68_v37 = vmax.f32 %v66_v35, %v67_v36  ;;  %v108_v4 = vrot.slane %v107_v2, 1 }
  0x23   :  { %v69_v38 = vrot.slane %v68_v37, 2  ;;  %vm109_vm4 = vcmp.lt.s32.totalorder %v107_v2, %v108_v4 }
  0x24   :  { %v110_v6 = vsel %vm109_vm4, %v107_v2, %v108_v4 }
  0x25   :  { %v70_v39 = vmax.f32 %v68_v37, %v69_v38  ;;  %vm111_vm5 = vcmp.eq.s32.totalorder %v33_v28, %v110_v6 }
  0x27   :  { %v71_v40 = vrot.slane %v70_v39, 1 }
  0x29   :  { %v72_v41 = vmax.f32 %v70_v39, %v71_v40 }
  0x2b   :  { %v73_v42 = vmax.f32 %v72_v41, 0.0 }
  0x2d   :  { %v74_v46 = vsub.f32 %v66_v35, %v73_v42  ;;  %v84_v58 = vsub.f32 0.0, %v73_v42 }
  0x2f   :  { %v75_v48 = vmul.f32 1.442695, %v74_v46  ;;  %v85_v61 = vmul.f32 1.442695, %v84_v58 }
  0x31   :  { %151 = vpow2.f32 %v75_v48 }
  0x32   :  { %153 = vpow2.f32 %v85_v61 }
  0x37   :  { %v152_v52 = vpop.eup %151 }
  0x38   :  { %v77_v53 = vsel %vm34_vm0, %v152_v52, 0.0  ;;  %v154_v3 = vpop.eup %153 }
  0x39   :  { %v78_v54 = vrot.slane %v77_v53, 4 }
  0x3b   :  { %v79_v57 = vadd.f32 %v78_v54, %v77_v53 }
  0x3d   :  { %v80_v59 = vrot.slane %v79_v57, 2 }
  0x3f   :  { %v81_v62 = vadd.f32 %v80_v59, %v79_v57 }
  0x41   :  { %v82_v0 = vrot.slane %v81_v62, 1 }
  0x43   :  { %v83_v1 = vadd.f32 %v82_v0, %v81_v62 }
  0x45   :  { %v87_v5 = vadd.f32 %v154_v3, %v83_v1 }
  0x47   :  { %155 = vlog2.f32 %v87_v5 }
  0x4d   :  { %v156_v7 = vpop.eup %155 }
  0x4e   :  { %v89_v10 = vmul.f32 0.6931472, %v156_v7 }
  0x50   :  { %v90_v13 = vadd.f32 %v89_v10, %v73_v42 }
  0x52   :  { %v92_v17 = vadd.f32 %v91_v14, %v90_v13 }
  0x79   :  { %v115_v8 = vpop.permute.xlu0 %114 }
  0x7a   :  { %v117_v9 = vsel %vm111_vm5, %v115_v8, 0.0 }
  0x7b   :  { %v118_v11 = vrot.slane %v117_v9, 4 }
  0x7d   :  { %v119_v12 = vadd.f32 %v118_v11, %v117_v9 }
  0x7f   :  { %v120_v15 = vrot.slane %v119_v12, 2 }
  0x81   :  { %v121_v16 = vadd.f32 %v120_v15, %v119_v12 }
  0x83   :  { %v122_v18 = vrot.slane %v121_v16, 1 }
  0x85   :  { %v123_v19 = vadd.f32 %v122_v18, %v121_v16 }
  0x87   :  { %v124_v20 = vmul.f32 %v123_v19, %v92_v17 }
  0x89   :  { %vm125_vm6 = vcmp.lt.f32.partialorder %v124_v20, 1.5  ;;  %v126_v21 = vmul.f32 1.8, %v124_v20 }
  0x8b   :  { %v127_v22 = vsel %vm125_vm6, %v126_v21, %v124_v20 }
  0x8c   :  { %v128_v23 = vmul.f32 1.5, %v127_v22 }
  0x8e   :  { %129 = vst [vmem:[#allocation5] sm:$0x1] %v128_v23 }
  0x8f   :  { %140 = dma.vmem_to_hbm [thread:$0]  %s136_s1, 16, %s138_s22, [#allocation4]  }
  0x90   :  { %207 = dma.done.wait [#allocation4], 16  }
  0x91   :  { %208 = vsyncadd [#allocation4], 4294967280 }
  0x92   :  { %145 = vsyncpa [#allocation3], 1 }
  0x93   :  { %146 = vsyncpa [#allocation4], 1 }

</bundles_post_ra>
